<compile_context>
chip_gen: v7x
topology: tpu7x:2x2x1
jax: 0.10.0
libtpu: 0.0.40
codegen_flags: <defaults>
</compile_context>

<pallas_src>
import numpy as np
import jax
import jax.numpy as jnp
from jax import lax
from jax.experimental import pallas as pl
from jax.experimental.pallas import tpu as pltpu


# ---------------------------------------------------------------------------
# Kernel
# ---------------------------------------------------------------------------
def deepsets_kernel(x_ref, w1_ref, b1_ref, w3a_ref, w23_ref, b23_ref,
                    w4_ref, b4_ref, o_ref):
    x3 = x_ref[...]                       # (TB, L, D) float32
    TB, L, D = x3.shape

    # ---- leave-one-out set max (== torch.mul(x.unsqueeze(2), ones-eye).max(1)[0]) ----
    # Row j gets max over i != j of x[i, d], clamped at 0 (the masked diagonal
    # contributes a literal 0 to the torch max).  O(L*D) instead of O(L^2*D).
    m1 = jnp.max(x3, axis=1, keepdims=True)                                # (TB,1,D)
    row = lax.broadcasted_iota(jnp.int32, (TB, L, D), 1)                   # set-row index
    first = jnp.min(jnp.where(x3 == m1, row, L), axis=1, keepdims=True)    # first argmax
    m2 = jnp.max(jnp.where(row == first, -jnp.inf, x3),
                 axis=1, keepdims=True)                                    # 2nd max (excl. first argmax)
    loo = jnp.where(row == first, m2, m1)                                  # (TB,L,D)
    combined = jnp.maximum(loo, 0.0)                                       # diagonal-zero clamp

    # ---- flatten sets into the matmul M dimension (free leading-dim merge, L % 8 == 0) ----
    x2 = x3.reshape(TB * L, D)            # f32: residual + gen3 "x" branch
    cm = combined.reshape(TB * L, D)

    xb = x2.astype(jnp.bfloat16)          # bf16 operands only for the MXU dots
    cb = cm.astype(jnp.bfloat16)

    # gen1 -> relu
    h1 = jnp.dot(cb, w1_ref[...], preferred_element_type=jnp.float32) + b1_ref[...]
    h1 = jnp.maximum(h1, 0.0)

    # gen3 with gen2 folded in (exact):
    #   relu(concat([x, gen2(h1)]) @ W3^T + b3)
    #     == relu(x @ W3a + h1 @ (W2^T @ W3b) + (b2 @ W3b + b3))
    h3 = (jnp.dot(xb, w3a_ref[...], preferred_element_type=jnp.float32)
          + jnp.dot(h1.astype(jnp.bfloat16), w23_ref[...],
                    preferred_element_type=jnp.float32)
          + b23_ref[...])
    h3 = jnp.maximum(h3, 0.0)

    # gen4 + residual
    out = jnp.dot(h3.astype(jnp.bfloat16), w4_ref[...],
                  preferred_element_type=jnp.float32) + b4_ref[...]
    o_ref[...] = (x2 + out).reshape(TB, L, D).astype(o_ref.dtype)


# ---------------------------------------------------------------------------
# Tiling / VMEM budgeting
# ---------------------------------------------------------------------------
# Per flattened row (one of the TB*L rows of a block):
#   x block   : D=32 f32 lane-padded to 128 lanes -> 512 B, double-buffered -> 1024 B
#   out block : same                               -> 1024 B
#   intermediates (h1/h3 f32 + bf16 copies, cb/xb, LOO temps, residual) ~ 3 KiB
_ROW_VMEM_BYTES = 5 * 1024
_VMEM_BUDGET = 36 << 20      # conservative: fits v7x's 64 MiB/TC as well as v5e/v6e 128 MiB
_MIN_ROWS_PER_STEP = 1024    # keep per-step compute well above the ~0.35us pipeline overhead


def _pick_tb(B, L, target_rows):
    """Sets per grid step.  Targets: TB*L rows in the multi-K range (amortize per-step
    overhead), stay inside the VMEM budget, >= 2 steps for large problems (v7x 2-TC
    sharding of the 'parallel' axis), and TB | B when possible (no padded copy of x)."""
    rows_cap = min(target_rows, (_VMEM_BUDGET - (2 << 20)) // _ROW_VMEM_BYTES)
    tb_cap = max(1, min(B, rows_cap // max(L, 1)))
    # Whole batch would fit in one step: split in two if the problem is large enough
    # to keep both v7x TensorCores busy.
    if tb_cap >= B and B > 1 and B * L >= 2 * _MIN_ROWS_PER_STEP:
        tb_cap = pl.cdiv(B, 2)
    tb = tb_cap
    for cand in range(tb_cap, 0, -1):            # largest divisor of B <= tb_cap
        if B % cand == 0:
            if 2 * cand >= tb_cap or cand * L >= _MIN_ROWS_PER_STEP:
                tb = cand                        # accept: avoids padding, still big enough
            break
    return tb


def deepsets_forward(x, kernel_params, *, target_rows=4096):
    """DeepSets forward.  x: (L, D) or (B, L, D) float32."""
    if x.ndim == 2:                       # mirror the PyTorch unsqueeze(0)
        x = x[None]
    B, L, D = x.shape
    (w1t, b1, w3a, w23, b23, w4t, b4) = kernel_params

    TB = _pick_tb(B, L, target_rows)
    n_steps = pl.cdiv(B, TB)
    Bp = n_steps * TB
    if Bp != B:                           # fallback only (no acceptable divisor of B)
        x = jnp.pad(x, ((0, Bp - B), (0, 0), (0, 0)))

    rows = TB * L
    # Explicit scoped-VMEM limit: double-buffered lane-padded blocks + intermediates
    # + resident weights, with headroom.  Always passed (v5e default is only 16 MiB);
    # capped at 48 MiB so it also fits v7x's 64 MiB per-TensorCore VMEM.
    vmem_limit = int(min(48 << 20, max(32 << 20, rows * _ROW_VMEM_BYTES + (4 << 20))))

    def resident(a):
        # Whole-array block with a constant index_map: stays VMEM-resident, no re-DMA.
        return pl.BlockSpec(a.shape, lambda b: (0,) * a.ndim)

    out = pl.pallas_call(
        deepsets_kernel,
        out_shape=jax.ShapeDtypeStruct((Bp, L, D), x.dtype),
        grid=(n_steps,),
        in_specs=[
            pl.BlockSpec((TB, L, D), lambda b: (b, 0, 0)),   # x: TB sets per step
            resident(w1t), resident(b1),
            resident(w3a), resident(w23), resident(b23),
            resident(w4t), resident(b4),
        ],
        out_specs=pl.BlockSpec((TB, L, D), lambda b: (b, 0, 0)),
        compiler_params=pltpu.CompilerParams(
            dimension_semantics=("parallel",),
            vmem_limit_bytes=vmem_limit),
    )(x, w1t, b1, w3a, w23, b23, w4t, b4)

    out = out[:B]
    return jnp.squeeze(out)               # mirror the PyTorch .squeeze()


# ---------------------------------------------------------------------------
# Parameters
# ---------------------------------------------------------------------------
def init_params(key, z_dim):
    """Deterministic nn.Linear-style init (uniform +/- 1/sqrt(fan_in)), torch layout."""
    D = z_dim

    def linear(k, fan_in, fan_out):
        k_w, k_b = jax.random.split(k)
        bound = 1.0 / np.sqrt(fan_in)
        w = jax.random.uniform(k_w, (fan_out, fan_in), jnp.float32, -bound, bound)
        b = jax.random.uniform(k_b, (fan_out,), jnp.float32, -bound, bound)
        return w, b

    k1, k2, k3, k4 = jax.random.split(key, 4)
    w1, b1 = linear(k1, D, 4 * D)         # gen1
    w2, b2 = linear(k2, 4 * D, D)         # gen2
    w3, b3 = linear(k3, 2 * D, 4 * D)     # gen3
    w4, b4 = linear(k4, 4 * D, D)         # gen4
    return (w1, b1, w2, b2, w3, b3, w4, b4)


def prepare_kernel_params(torch_params):
    """Pre-transpose to (in, out), fold gen2 into the gen3 'combined' branch
    (W23 = W2^T @ W3b, b23 = b2 @ W3b + b3 — exact), bf16 weights, f32 (1, out) biases."""
    w1, b1, w2, b2, w3, b3, w4, b4 = torch_params
    D = w1.shape[1]
    w1t = w1.T                            # (D, 4D)
    w2t = w2.T                            # (4D, D)
    w3t = w3.T                            # (2D, 4D)
    w3a = w3t[:D]                         # (D, 4D): multiplies x
    w3b = w3t[D:]                         # (D, 4D): multiplies gen2 output
    w23 = w2t @ w3b                       # (4D, 4D), composed in f32
    b23 = b2 @ w3b + b3                   # (4D,)
    bf = lambda a: a.astype(jnp.bfloat16)
    return (bf(w1t), b1[None, :],
            bf(w3a), bf(w23), b23[None, :],
            bf(w4.T), b4[None, :])


# ---------------------------------------------------------------------------
# References
# ---------------------------------------------------------------------------
def reference_f32(x, torch_params):
    """Pure-JAX f32 reference reproducing the PyTorch forward exactly."""
    if x.ndim == 2:
        x = x[None]
    B, L, D = x.shape
    w1, b1, w2, b2, w3, b3, w4, b4 = torch_params
    mask_one = (jnp.ones((L, L)) - jnp.eye(L)).reshape(1, L, L, 1)
    combined = jnp.max(x[:, :, None, :] * mask_one, axis=1)      # (B, L, D)
    cm = combined.reshape(-1, D)
    cm = jax.nn.relu(cm @ w1.T + b1)
    cm = cm @ w2.T + b2
    cat = jnp.concatenate([x.reshape(-1, D), cm], axis=1)
    cat = jax.nn.relu(cat @ w3.T + b3)
    out = cat @ w4.T + b4
    return jnp.squeeze(x + out.reshape(B, L, D))


def reference_matched(x, kernel_params):
    """Pure-JAX reference mirroring the kernel's math (bf16 MXU operands, f32 accumulation,
    folded gen2->gen3b weight) for a tight correctness check."""
    if x.ndim == 2:
        x = x[None]
    B, L, D = x.shape
    w1t, b1, w3a, w23, b23, w4t, b4 = kernel_params
    mask_one = (jnp.ones((L, L)) - jnp.eye(L)).reshape(1, L, L, 1)
    combined = jnp.max(x[:, :, None, :] * mask_one, axis=1).reshape(-1, D)
    x2 = x.reshape(-1, D)
    dot = lambda a, w: jnp.dot(a.astype(jnp.bfloat16), w,
                               preferred_element_type=jnp.float32)
    h1 = jax.nn.relu(dot(combined, w1t) + b1)
    h3 = jax.nn.relu(dot(x2, w3a) + dot(h1, w23) + b23)
    out = dot(h3, w4t) + b4
    return jnp.squeeze(x + out.reshape(B, L, D))


# ---------------------------------------------------------------------------
# Demo / self-test
# ---------------------------------------------------------------------------
if __name__ == "__main__":
    Z_DIM = 32   # z_dim
    B, L = 2, 8  # batch of sets, set size

    key = jax.random.PRNGKey(0)
    k_x, k_p = jax.random.split(key)
    x = jax.random.normal(k_x, (B, L, Z_DIM), dtype=jnp.float32)

    torch_params = init_params(k_p, Z_DIM)
    kparams = prepare_kernel_params(torch_params)

    y = deepsets_forward(x, kparams)
    y = jax.block_until_ready(y)

    # Tight check against a precision-matched reference (same bf16 dots, same W23 fold).
    y_match = reference_matched(x, kparams)
    np.testing.assert_allclose(np.asarray(y), np.asarray(y_match), rtol=2e-3, atol=2e-3)

    # Looser check against the exact-f32 PyTorch-equivalent reference (bf16 MXU operands).
    y_f32 = reference_f32(x, torch_params)
    np.testing.assert_allclose(np.asarray(y), np.asarray(y_f32), rtol=5e-2, atol=5e-2)

    print("KERNEL_OK")
</pallas_src>

<mosaic_0001>
module attributes {stable_mosaic.version = 11 : i64} {
  func.func @deepsets_kernel(%arg0: i32, %arg1: memref<2x8x32xf32, #tpu.memory_space<vmem>>, %arg2: memref<32x128xbf16, #tpu.memory_space<vmem>>, %arg3: memref<1x128xf32, #tpu.memory_space<vmem>>, %arg4: memref<32x128xbf16, #tpu.memory_space<vmem>>, %arg5: memref<128x128xbf16, #tpu.memory_space<vmem>>, %arg6: memref<1x128xf32, #tpu.memory_space<vmem>>, %arg7: memref<128x32xbf16, #tpu.memory_space<vmem>>, %arg8: memref<1x32xf32, #tpu.memory_space<vmem>>, %arg9: memref<2x8x32xf32, #tpu.memory_space<vmem>>) attributes {dimension_semantics = [#tpu.dimension_semantics<parallel>], iteration_bounds = array<i64: 1>, scalar_prefetch = 0 : i64, scratch_operands = 0 : i64, tpu.core_type = #tpu.core_type<tc>, window_params = [{transform_indices = @transform_0, window_bounds = array<i64: 2, 8, 32>}, {pipeline_mode = #tpu.pipeline_mode<synchronous>, transform_indices = @transform_1, window_bounds = array<i64: 32, 128>}, {pipeline_mode = #tpu.pipeline_mode<synchronous>, transform_indices = @transform_2, window_bounds = array<i64: 1, 128>}, {pipeline_mode = #tpu.pipeline_mode<synchronous>, transform_indices = @transform_3, window_bounds = array<i64: 32, 128>}, {pipeline_mode = #tpu.pipeline_mode<synchronous>, transform_indices = @transform_4, window_bounds = array<i64: 128, 128>}, {pipeline_mode = #tpu.pipeline_mode<synchronous>, transform_indices = @transform_5, window_bounds = array<i64: 1, 128>}, {pipeline_mode = #tpu.pipeline_mode<synchronous>, transform_indices = @transform_6, window_bounds = array<i64: 128, 32>}, {pipeline_mode = #tpu.pipeline_mode<synchronous>, transform_indices = @transform_7, window_bounds = array<i64: 1, 32>}, {transform_indices = @transform_8, window_bounds = array<i64: 2, 8, 32>}]} {
    %c0 = arith.constant 0 : index
    %c0_0 = arith.constant 0 : index
    %c0_1 = arith.constant 0 : index
    %0 = vector.load %arg1[%c0, %c0_0, %c0_1] : memref<2x8x32xf32, #tpu.memory_space<vmem>>, vector<2x8x32xf32>
    %cst = arith.constant dense<0xFF800000> : vector<2x32xf32>
    %1 = vector.multi_reduction <maximumf>, %0, %cst [1] : vector<2x8x32xf32> to vector<2x32xf32>
    %2 = vector.shape_cast %1 : vector<2x32xf32> to vector<2x1x32xf32>
    %3 = tpu.iota {dimensions = array<i32: 1>} : vector<2x8x32xi32>
    %4 = vector.broadcast %2 : vector<2x1x32xf32> to vector<2x8x32xf32>
    %5 = arith.cmpf oeq, %0, %4 : vector<2x8x32xf32>
    %c8_i32 = arith.constant 8 : i32
    %6 = vector.broadcast %c8_i32 : i32 to vector<2x8x32xi32>
    %7 = arith.select %5, %3, %6 : vector<2x8x32xi1>, vector<2x8x32xi32>
    %cst_2 = arith.constant dense<2147483647> : vector<2x32xi32>
    %8 = vector.multi_reduction <minsi>, %7, %cst_2 [1] : vector<2x8x32xi32> to vector<2x32xi32>
    %9 = vector.shape_cast %8 : vector<2x32xi32> to vector<2x1x32xi32>
    %10 = vector.broadcast %9 : vector<2x1x32xi32> to vector<2x8x32xi32>
    %11 = arith.cmpi eq, %3, %10 : vector<2x8x32xi32>
    %cst_3 = arith.constant 0xFF800000 : f32
    %12 = vector.broadcast %cst_3 : f32 to vector<2x8x32xf32>
    %13 = arith.select %11, %12, %0 : vector<2x8x32xi1>, vector<2x8x32xf32>
    %cst_4 = arith.constant dense<0xFF800000> : vector<2x32xf32>
    %14 = vector.multi_reduction <maximumf>, %13, %cst_4 [1] : vector<2x8x32xf32> to vector<2x32xf32>
    %15 = vector.shape_cast %14 : vector<2x32xf32> to vector<2x1x32xf32>
    %16 = vector.broadcast %9 : vector<2x1x32xi32> to vector<2x8x32xi32>
    %17 = arith.cmpi eq, %3, %16 : vector<2x8x32xi32>
    %18 = vector.shape_cast %15 : vector<2x1x32xf32> to vector<2x1x32xf32>
    %19 = vector.broadcast %18 : vector<2x1x32xf32> to vector<2x8x32xf32>
    %20 = vector.shape_cast %2 : vector<2x1x32xf32> to vector<2x1x32xf32>
    %21 = vector.broadcast %20 : vector<2x1x32xf32> to vector<2x8x32xf32>
    %22 = arith.select %17, %19, %21 : vector<2x8x32xi1>, vector<2x8x32xf32>
    %cst_5 = arith.constant 0.000000e+00 : f32
    %23 = vector.broadcast %cst_5 : f32 to vector<2x8x32xf32>
    %24 = arith.maximumf %22, %23 : vector<2x8x32xf32>
    %25 = vector.shape_cast %0 : vector<2x8x32xf32> to vector<16x32xf32>
    %26 = vector.shape_cast %24 : vector<2x8x32xf32> to vector<16x32xf32>
    %27 = arith.truncf %25 : vector<16x32xf32> to vector<16x32xbf16>
    %28 = arith.truncf %26 : vector<16x32xf32> to vector<16x32xbf16>
    %c0_6 = arith.constant 0 : index
    %c0_7 = arith.constant 0 : index
    %29 = vector.load %arg2[%c0_6, %c0_7] : memref<32x128xbf16, #tpu.memory_space<vmem>>, vector<32x128xbf16>
    %cst_8 = arith.constant dense<0.000000e+00> : vector<16x128xf32>
    %30 = tpu.matmul %28, %29, %cst_8 {dimension_numbers = #tpu.dot_dimension_numbers<[1], [0], [0], [1], [0, 0, 1, 1], [], []>} : vector<16x32xbf16>, vector<32x128xbf16>, vector<16x128xf32> -> vector<16x128xf32>
    %c0_9 = arith.constant 0 : index
    %c0_10 = arith.constant 0 : index
    %31 = vector.load %arg3[%c0_9, %c0_10] : memref<1x128xf32, #tpu.memory_space<vmem>>, vector<1x128xf32>
    %32 = vector.broadcast %31 : vector<1x128xf32> to vector<16x128xf32>
    %33 = arith.addf %30, %32 : vector<16x128xf32>
    %cst_11 = arith.constant 0.000000e+00 : f32
    %34 = vector.broadcast %cst_11 : f32 to vector<16x128xf32>
    %35 = arith.maximumf %33, %34 : vector<16x128xf32>
    %c0_12 = arith.constant 0 : index
    %c0_13 = arith.constant 0 : index
    %36 = vector.load %arg4[%c0_12, %c0_13] : memref<32x128xbf16, #tpu.memory_space<vmem>>, vector<32x128xbf16>
    %cst_14 = arith.constant dense<0.000000e+00> : vector<16x128xf32>
    %37 = tpu.matmul %27, %36, %cst_14 {dimension_numbers = #tpu.dot_dimension_numbers<[1], [0], [0], [1], [0, 0, 1, 1], [], []>} : vector<16x32xbf16>, vector<32x128xbf16>, vector<16x128xf32> -> vector<16x128xf32>
    %38 = arith.truncf %35 : vector<16x128xf32> to vector<16x128xbf16>
    %c0_15 = arith.constant 0 : index
    %c0_16 = arith.constant 0 : index
    %39 = vector.load %arg5[%c0_15, %c0_16] : memref<128x128xbf16, #tpu.memory_space<vmem>>, vector<128x128xbf16>
    %cst_17 = arith.constant dense<0.000000e+00> : vector<16x128xf32>
    %40 = tpu.matmul %38, %39, %cst_17 {dimension_numbers = #tpu.dot_dimension_numbers<[1], [0], [0], [1], [0, 0, 1, 1], [], []>} : vector<16x128xbf16>, vector<128x128xbf16>, vector<16x128xf32> -> vector<16x128xf32>
    %41 = arith.addf %37, %40 : vector<16x128xf32>
    %c0_18 = arith.constant 0 : index
    %c0_19 = arith.constant 0 : index
    %42 = vector.load %arg6[%c0_18, %c0_19] : memref<1x128xf32, #tpu.memory_space<vmem>>, vector<1x128xf32>
    %43 = vector.broadcast %42 : vector<1x128xf32> to vector<16x128xf32>
    %44 = arith.addf %41, %43 : vector<16x128xf32>
    %cst_20 = arith.constant 0.000000e+00 : f32
    %45 = vector.broadcast %cst_20 : f32 to vector<16x128xf32>
    %46 = arith.maximumf %44, %45 : vector<16x128xf32>
    %47 = arith.truncf %46 : vector<16x128xf32> to vector<16x128xbf16>
    %c0_21 = arith.constant 0 : index
    %c0_22 = arith.constant 0 : index
    %48 = vector.load %arg7[%c0_21, %c0_22] : memref<128x32xbf16, #tpu.memory_space<vmem>>, vector<128x32xbf16>
    %cst_23 = arith.constant dense<0.000000e+00> : vector<16x32xf32>
    %49 = tpu.matmul %47, %48, %cst_23 {dimension_numbers = #tpu.dot_dimension_numbers<[1], [0], [0], [1], [0, 0, 1, 1], [], []>} : vector<16x128xbf16>, vector<128x32xbf16>, vector<16x32xf32> -> vector<16x32xf32>
    %c0_24 = arith.constant 0 : index
    %c0_25 = arith.constant 0 : index
    %50 = vector.load %arg8[%c0_24, %c0_25] : memref<1x32xf32, #tpu.memory_space<vmem>>, vector<1x32xf32>
    %51 = vector.broadcast %50 : vector<1x32xf32> to vector<16x32xf32>
    %52 = arith.addf %49, %51 : vector<16x32xf32>
    %53 = arith.addf %25, %52 : vector<16x32xf32>
    %54 = vector.shape_cast %53 : vector<16x32xf32> to vector<2x8x32xf32>
    %c0_26 = arith.constant 0 : index
    %c0_27 = arith.constant 0 : index
    %c0_28 = arith.constant 0 : index
    %55 = vector.load %arg9[%c0_26, %c0_27, %c0_28] : memref<2x8x32xf32, #tpu.memory_space<vmem>>, vector<2x8x32xf32>
    tpu.vector_store %arg9[%c0_26, %c0_27, %c0_28], %54 {strides = array<i32>} : memref<2x8x32xf32, #tpu.memory_space<vmem>>, vector<2x8x32xf32>,
    return
  }
  func.func @transform_0(%arg0: i32) -> (i32, i32, i32) {
    %c0_i32 = arith.constant 0 : i32
    %c0_i32_0 = arith.constant 0 : i32
    %c0_i32_1 = arith.constant 0 : i32
    return %arg0, %c0_i32, %c0_i32_0 : i32, i32, i32
  }
  func.func @transform_1(%arg0: i32) -> (i32, i32) {
    %c0_i32 = arith.constant 0 : i32
    %c0_i32_0 = arith.constant 0 : i32
    %c0_i32_1 = arith.constant 0 : i32
    return %c0_i32, %c0_i32_0 : i32, i32
  }
  func.func @transform_2(%arg0: i32) -> (i32, i32) {
    %c0_i32 = arith.constant 0 : i32
    %c0_i32_0 = arith.constant 0 : i32
    %c0_i32_1 = arith.constant 0 : i32
    return %c0_i32, %c0_i32_0 : i32, i32
  }
  func.func @transform_3(%arg0: i32) -> (i32, i32) {
    %c0_i32 = arith.constant 0 : i32
    %c0_i32_0 = arith.constant 0 : i32
    %c0_i32_1 = arith.constant 0 : i32
    return %c0_i32, %c0_i32_0 : i32, i32
  }
  func.func @transform_4(%arg0: i32) -> (i32, i32) {
    %c0_i32 = arith.constant 0 : i32
    %c0_i32_0 = arith.constant 0 : i32
    %c0_i32_1 = arith.constant 0 : i32
    return %c0_i32, %c0_i32_0 : i32, i32
  }
  func.func @transform_5(%arg0: i32) -> (i32, i32) {
    %c0_i32 = arith.constant 0 : i32
    %c0_i32_0 = arith.constant 0 : i32
    %c0_i32_1 = arith.constant 0 : i32
    return %c0_i32, %c0_i32_0 : i32, i32
  }
  func.func @transform_6(%arg0: i32) -> (i32, i32) {
    %c0_i32 = arith.constant 0 : i32
    %c0_i32_0 = arith.constant 0 : i32
    %c0_i32_1 = arith.constant 0 : i32
    return %c0_i32, %c0_i32_0 : i32, i32
  }
  func.func @transform_7(%arg0: i32) -> (i32, i32) {
    %c0_i32 = arith.constant 0 : i32
    %c0_i32_0 = arith.constant 0 : i32
    %c0_i32_1 = arith.constant 0 : i32
    return %c0_i32, %c0_i32_0 : i32, i32
  }
  func.func @transform_8(%arg0: i32) -> (i32, i32, i32) {
    %c0_i32 = arith.constant 0 : i32
    %c0_i32_0 = arith.constant 0 : i32
    %c0_i32_1 = arith.constant 0 : i32
    return %arg0, %c0_i32, %c0_i32_0 : i32, i32, i32
  }
}

</mosaic_0001>

<bundles_post_ra>
// kernel: tpu_custom_call.1
= control target key start
LH: loop header
LB: loop body
LE: loop exit
PB: predicated region body
PF: predicated region fallthrough
CT: control target
= control target key end

     0   :  { %13 = vsyncpa [#allocation3], 0  ;;  %s922_s0 = inlined_call_operand.vmem [shape: f32[2,8,32], index: 0, kind: input, shape index: {}]   ;;  %s923_s1 = inlined_call_operand.hbm [shape: bf16[32,128], index: 1, kind: input, shape index: {}]   ;;  %s924_s2 = inlined_call_operand.vmem [shape: f32[1,128], index: 2, kind: input, shape index: {}]   ;;  %s925_s3 = inlined_call_operand.hbm [shape: bf16[32,128], index: 3, kind: input, shape index: {}]   ;;  %s926_s4 = inlined_call_operand.vmem [shape: bf16[128,128], index: 4, kind: input, shape index: {}]   ;;  %s927_s5 = inlined_call_operand.vmem [shape: f32[1,128], index: 5, kind: input, shape index: {}]   ;;  %s928_s6 = inlined_call_operand.vmem [shape: bf16[128,32], index: 6, kind: input, shape index: {}]   ;;  %s929_s7 = inlined_call_operand.vmem [shape: f32[1,32], index: 7, kind: input, shape index: {}]   ;;  %s930_s8 = inlined_call_operand.hbm [shape: f32[2,8,32], index: 8, kind: output, shape index: {}]  }
   0x1   :  { %14 = vsyncpa [#allocation6], 0 }
   0x2   :  { %15 = vsyncpa [#allocation4], 0  ;;  %s713_s27 = smov [#allocation2]   ;;  %s641_s9 = scalar_lea.hbm %s923_s1, 256 }
   0x3   :  { %s23_s28 = sshll.u32 %s713_s27, 4  ;;  %p642_p0 = scmp.ne.s32.totalorder %s923_s1, %s641_s9  ;;  %s24_s28 = int_to_ptr.vmem [resolvable:$true] %s23_s28 }
   0x4   :  { %p645_p1 = scmp.lt.u32.totalorder %s641_s9, %s923_s1 }
   0x6   :  { %p647_p2 = pnand %p645_p1, %p642_p0 }
   0x8   :  { %650 = shalt.err (!%p647_p2)
}
   0x9   :  { %s651_s14 = scalar_lea.vmem %s24_s28, 256  ;;  %p656_p4 = scmp.lt.s32.totalorder %s24_s28, %s24_s28 }
   0xa   :  { %p652_p3 = scmp.ne.s32.totalorder %s24_s28, %s651_s14  ;;  %p657_p5 = scmp.lt.s32.totalorder %s651_s14, %s651_s14 }
   0xc   :  { %p658_p6 = por %p657_p5, %p656_p4 }
   0xe   :  { %p659_p7 = pnand %p658_p6, %p652_p3 }
  0x10   :  { %662 = shalt.err (!%p659_p7)
}
  0x11   :  { %s714_s15 = smov 64   ;;  %s715_s16 = smov 4  }
  0x12   :  { %29 = dma.hbm_to_vmem [thread:$0]  %s923_s1, 256, %s24_s28, [#allocation3], %s714_s15, %s714_s15, %s715_s16  }
  0x13   :  { %s716_s19 = smov [#allocation5]   ;;  %s663_s23 = scalar_lea.hbm %s925_s3, 256 }
  0x14   :  { %s37_s20 = sshll.u32 %s716_s19, 4  ;;  %p664_p8 = scmp.ne.s32.totalorder %s925_s3, %s663_s23  ;;  %s38_s20 = int_to_ptr.vmem [resolvable:$true] %s37_s20 }
  0x15   :  { %p667_p9 = scmp.lt.u32.totalorder %s663_s23, %s925_s3 }
  0x17   :  { %p669_p10 = pnand %p667_p9, %p664_p8 }
  0x19   :  { %672 = shalt.err (!%p669_p10)
}
  0x1a   :  { %s673_s29 = scalar_lea.vmem %s38_s20, 256  ;;  %p678_p12 = scmp.lt.s32.totalorder %s38_s20, %s38_s20 }
  0x1b   :  { %p674_p11 = scmp.ne.s32.totalorder %s38_s20, %s673_s29  ;;  %p679_p13 = scmp.lt.s32.totalorder %s673_s29, %s673_s29 }
  0x1d   :  { %p680_p0 = por %p679_p13, %p678_p12 }
  0x1f   :  { %p681_p1 = pnand %p680_p0, %p674_p11 }
  0x21   :  { %684 = shalt.err (!%p681_p1)
}
  0x22   :  { %43 = dma.hbm_to_vmem [thread:$0]  %s925_s3, 256, %s38_s20, [#allocation6], %s714_s15, %s714_s15, %s715_s16  }
  0x23   :  { %707 = dma.done.wait [#allocation3], 256  }
  0x24   :  { %708 = vsyncadd [#allocation3], 4294967040 }
  0x25   :  { %709 = dma.done.wait [#allocation6], 256  }
  0x26   :  { %710 = vsyncadd [#allocation6], 4294967040  ;;  %v717_v0 = vmov 0.0   ;;  %vm718_vm0 = vmmov 0   ;;  %v621_v1 = vld [vmem:[#allocation2] sm:$0xff]   ;;  %vm61_vm1 = vcmask 261120   ;;  %v76_v11 = vlaneseq }
  0x27   :  { %556 = vmatprep.subr.bf16.mxu1 %v717_v0  ;;  %560 = vmatprep.mubr.msk.bf16.mxu1 %vm718_vm0, %v717_v0  ;;  %v622_v2 = vld [vmem:[#allocation2 + $0x8] sm:$0xff]   ;;  %v800_v3 = vld [vmem:[%s922_s0] sm:$0xff]  ;;  %v629_v17 = vld [vmem:[#allocation5] sm:$0xff]  }
  0x28   :  { %584 = vmatprep.subr.bf16.mxu0 %v717_v0  ;;  %588 = vmatprep.mubr.msk.bf16.mxu0 %vm718_vm0, %v717_v0  ;;  %v805_v4 = vld [vmem:[%s922_s0 + $0x8] sm:$0xff]  ;;  %v62_v5 = vsel %vm61_vm1, %v800_v3, -inf  ;;  %v77_v16 = vshrl.u32 %v76_v11, 7  ;;  %v623_v58 = vld [vmem:[%s926_s4] sm:$0xff]   ;;  %v625_v61 = vld [vmem:[%s926_s4 + $0x10] sm:$0xff]  }
  0x29   :  { %557 = vmatpush3.bf16.msra.mxu1 %v621_v1  ;;  %v69_v6 = vsel %vm61_vm1, %v805_v4, -inf  ;;  %v63_v7 = vrot.slane %v62_v5, 4  ;;  %585 = vmatpush3.bf16.msra.mxu0 %v629_v17  ;;  %v624_v60 = vld [vmem:[%s926_s4 + $0x8] sm:$0xff]   ;;  %v626_v62 = vld [vmem:[%s926_s4 + $0x18] sm:$0xff]   ;;  %v627_v63 = vld [vmem:[%s926_s4 + $0x20] sm:$0xff]  }
  0x2a   :  { %558 = vmatprep.subr.bf16.mxu1 %v717_v0  ;;  %v70_v8 = vrot.slane %v69_v6, 4  ;;  %586 = vmatprep.subr.bf16.mxu0 %v717_v0  ;;  %v628_v1 = vld [vmem:[%s926_s4 + $0x28] sm:$0xff]   ;;  %v636_v11 = vld [vmem:[%s928_s6 + $0x18] sm:$0xff]  }
  0x2b   :  { %v64_v9 = vmax.f32 %v62_v5, %v63_v7  ;;  %v631_v5 = vld [vmem:[#allocation5 + $0x8] sm:$0xff]   ;;  %v124_v7 = vpack.c.bf16 %v805_v4, %v800_v3 }
  0x2c   :  { %v71_v10 = vmax.f32 %v69_v6, %v70_v8  ;;  %v632_v6 = vld [vmem:[%s926_s4 + $0x38] sm:$0xff]   ;;  %v633_v8 = vld [vmem:[%s928_s6] sm:$0xff]  }
  0x2d   :  { %559 = vmatpush3.bf16.msra.mxu1 %v622_v2  ;;  %v65_v12 = vrot.slane %v64_v9, 2  ;;  %v630_v2 = vld [vmem:[%s926_s4 + $0x30] sm:$0xff]   ;;  %587 = vmatpush3.bf16.msra.mxu0 %v631_v5 }
  0x2e   :  { %564 = vmatprep.subr.bf16.mxu1 %v717_v0  ;;  %v72_v13 = vrot.slane %v71_v10, 2  ;;  %592 = vmatprep.subr.bf16.mxu0 %v717_v0 }
  0x2f   :  { %v66_v14 = vmax.f32 %v64_v9, %v65_v12  ;;  %v634_v9 = vld [vmem:[%s928_s6 + $0x8] sm:$0xff]   ;;  %v637_v12 = vld [vmem:[%s928_s6 + $0x20] sm:$0xff]  }
  0x30   :  { %v73_v15 = vmax.f32 %v71_v10, %v72_v13  ;;  %589 = vmatmul.mubr.msk.bf16.vlgmr.msra.gmra.mrb[0].mxu0 %vm61_vm1, %v124_v7  ;;  %v635_v10 = vld [vmem:[%s928_s6 + $0x10] sm:$0xff]   ;;  %v507_v13 = vld [vmem:[%s924_s2] ss:$0 sm:$0xff] }
  0x31   :  { %v67_v18 = vrot.slane %v66_v14, 1  ;;  %608 = vmatprep.mubr.msk.bf16.mxu0 %vm718_vm0, %v717_v0  ;;  %593 = vmatpush3.bf16.msra.mxu0 %v633_v8 }
  0x32   :  { %v74_v19 = vrot.slane %v73_v15, 1  ;;  %594 = vmatprep.subr.bf16.mxu0 %v717_v0 }
  0x33   :  { %v68_v20 = vmax.f32 %v66_v14, %v67_v18 }
  0x34   :  { %v75_v21 = vmax.f32 %v73_v15, %v74_v19 }
  0x35   :  { %vm78_vm2 = vcmp.eq.f32.partialorder %v800_v3, %v68_v20  ;;  %595 = vmatpush3.bf16.msra.mxu0 %v634_v9 }
  0x36   :  { %vm79_vm3 = vcmp.eq.f32.partialorder %v805_v4, %v75_v21  ;;  %v80_v22 = vsel %vm78_vm2, %v77_v16, 8  ;;  %596 = vmatprep.subr.bf16.mxu0 %v717_v0 }
  0x37   :  { %v81_v23 = vsel %vm79_vm3, %v77_v16, 8  ;;  %v82_v24 = vsel %vm61_vm1, %v80_v22, 2147483647 }
  0x38   :  { %v92_v25 = vsel %vm61_vm1, %v81_v23, 2147483647  ;;  %v83_v26 = vrot.slane %v82_v24, 4 }
  0x39   :  { %v93_v27 = vrot.slane %v92_v25, 4  ;;  %597 = vmatpush3.bf16.msra.mxu0 %v635_v10 }
  0x3a   :  { %vm84_vm4 = vcmp.lt.s32.totalorder %v82_v24, %v83_v26  ;;  %598 = vmatprep.subr.bf16.mxu0 %v717_v0 }
  0x3b   :  { %vm94_vm5 = vcmp.lt.s32.totalorder %v92_v25, %v93_v27  ;;  %v85_v28 = vsel %vm84_vm4, %v82_v24, %v83_v26 }
  0x3c   :  { %v95_v29 = vsel %vm94_vm5, %v92_v25, %v93_v27  ;;  %v86_v30 = vrot.slane %v85_v28, 2  ;;  %v638_v25 = vld [vmem:[%s928_s6 + $0x28] sm:$0xff]  }
  0x3d   :  { %v96_v31 = vrot.slane %v95_v29, 2  ;;  %599 = vmatpush3.bf16.msra.mxu0 %v636_v11 }
  0x3e   :  { %vm87_vm6 = vcmp.lt.s32.totalorder %v85_v28, %v86_v30  ;;  %600 = vmatprep.subr.bf16.mxu0 %v717_v0 }
  0x3f   :  { %vm97_vm7 = vcmp.lt.s32.totalorder %v95_v29, %v96_v31  ;;  %v88_v32 = vsel %vm87_vm6, %v85_v28, %v86_v30  ;;  %v639_v28 = vld [vmem:[%s928_s6 + $0x30] sm:$0xff]  }
  0x40   :  { %v98_v33 = vsel %vm97_vm7, %v95_v29, %v96_v31  ;;  %v89_v34 = vrot.slane %v88_v32, 1  ;;  %v640_v29 = vld [vmem:[%s928_s6 + $0x38] sm:$0xff]   ;;  %v522_v31 = vld [vmem:[%s927_s5] ss:$0 sm:$0xff]  ;;  %s719_s6 = smov [#allocation7]  }
  0x41   :  { %v99_v35 = vrot.slane %v98_v33, 1  ;;  %601 = vmatpush3.bf16.msra.mxu0 %v637_v12  ;;  %s494_s5 = sshll.u32 %s719_s6, 4  ;;  %s495_s5 = int_to_ptr.vmem [resolvable:$true] %s494_s5 }
  0x42   :  { %vm90_vm8 = vcmp.lt.s32.totalorder %v88_v32, %v89_v34  ;;  %602 = vmatprep.subr.bf16.mxu0 %v717_v0  ;;  %s685_s21 = scalar_lea.vmem %s495_s5, 256  ;;  %p690_p3 = scmp.lt.s32.totalorder %s495_s5, %s495_s5 }
  0x43   :  { %vm100_vm9 = vcmp.lt.s32.totalorder %v98_v33, %v99_v35  ;;  %v91_v36 = vsel %vm90_vm8, %v88_v32, %v89_v34  ;;  %p686_p2 = scmp.ne.s32.totalorder %s495_s5, %s685_s21  ;;  %p691_p4 = scmp.lt.s32.totalorder %s685_s21, %s685_s21 }
  0x44   :  { %v101_v37 = vsel %vm100_vm9, %v98_v33, %v99_v35  ;;  %vm102_vm10 = vcmp.eq.s32.totalorder %v77_v16, %v91_v36 }
  0x45   :  { %vm103_vm11 = vcmp.eq.s32.totalorder %v77_v16, %v101_v37  ;;  %v104_v38 = vsel %vm102_vm10, -inf, %v800_v3  ;;  %603 = vmatpush3.bf16.msra.mxu0 %v638_v25  ;;  %p692_p5 = por %p691_p4, %p690_p3 }
  0x46   :  { %v105_v39 = vsel %vm103_vm11, -inf, %v805_v4  ;;  %v106_v40 = vsel %vm61_vm1, %v104_v38, -inf  ;;  %604 = vmatprep.subr.bf16.mxu0 %v717_v0 }
  0x47   :  { %v113_v41 = vsel %vm61_vm1, %v105_v39, -inf  ;;  %v107_v42 = vrot.slane %v106_v40, 4  ;;  %p693_p6 = pnand %p692_p5, %p686_p2 }
  0x48   :  { %v114_v43 = vrot.slane %v113_v41, 4 }
  0x49   :  { %v108_v44 = vmax.f32 %v106_v40, %v107_v42  ;;  %605 = vmatpush3.bf16.msra.mxu0 %v639_v28 }
  0x4a   :  { %v115_v45 = vmax.f32 %v113_v41, %v114_v43  ;;  %606 = vmatprep.subr.bf16.mxu0 %v717_v0  ;;  %v523_v41 = vld [vmem:[%s929_s7] ss:$0 sm:$0xff] }
  0x4b   :  { %v109_v46 = vrot.slane %v108_v44, 2 }
  0x4c   :  { %v116_v47 = vrot.slane %v115_v45, 2 }
  0x4d   :  { %v110_v48 = vmax.f32 %v108_v44, %v109_v46  ;;  %607 = vmatpush3.bf16.msra.mxu0 %v640_v29 }
  0x4e   :  { %v117_v49 = vmax.f32 %v115_v45, %v116_v47 }
  0x4f   :  { %v111_v50 = vrot.slane %v110_v48, 1 }
  0x50   :  { %v118_v51 = vrot.slane %v117_v49, 1 }
  0x51   :  { %v112_v52 = vmax.f32 %v110_v48, %v111_v50 }
  0x52   :  { %v119_v53 = vmax.f32 %v117_v49, %v118_v51 }
  0x53   :  { %v120_v54 = vsel %vm102_vm10, %v112_v52, %v68_v20 }
  0x54   :  { %v121_v55 = vsel %vm103_vm11, %v119_v53, %v75_v21  ;;  %v122_v56 = vmax.f32 %v120_v54, 0.0 }
  0x55   :  { %v123_v57 = vmax.f32 %v121_v55, 0.0 }
  0x57   :  { %v125_v59 = vpack.c.bf16 %v123_v57, %v122_v56 }
  0x59   :  { %561 = vmatmul.mubr.msk.bf16.vlgmr.msra.gmra.mrb[0].mxu1 %vm61_vm1, %v125_v59 }
  0x5a   :  { %565 = vmatpush3.bf16.msra.mxu1 %v623_v58  ;;  %580 = vmatprep.mubr.msk.bf16.mxu1 %vm718_vm0, %v717_v0 }
  0x5b   :  { %566 = vmatprep.subr.bf16.mxu1 %v717_v0 }
  0x5e   :  { %567 = vmatpush3.bf16.msra.mxu1 %v624_v60 }
  0x5f   :  { %568 = vmatprep.subr.bf16.mxu1 %v717_v0 }
  0x62   :  { %569 = vmatpush3.bf16.msra.mxu1 %v625_v61 }
  0x63   :  { %570 = vmatprep.subr.bf16.mxu1 %v717_v0 }
  0x66   :  { %571 = vmatpush3.bf16.msra.mxu1 %v626_v62 }
  0x67   :  { %572 = vmatprep.subr.bf16.mxu1 %v717_v0 }
  0x6a   :  { %573 = vmatpush3.bf16.msra.mxu1 %v627_v63 }
  0x6b   :  { %574 = vmatprep.subr.bf16.mxu1 %v717_v0 }
  0x6e   :  { %575 = vmatpush3.bf16.msra.mxu1 %v628_v1 }
  0x6f   :  { %576 = vmatprep.subr.bf16.mxu1 %v717_v0 }
  0x72   :  { %577 = vmatpush3.bf16.msra.mxu1 %v630_v2 }
  0x73   :  { %578 = vmatprep.subr.bf16.mxu1 %v717_v0 }
  0x76   :  { %579 = vmatpush3.bf16.msra.mxu1 %v632_v6 }
 0x103   :  { %v354_v23 = vpop.f32.mrb[0].mxu0 }
 0x104   :  { %v590_v24 = vpop.f32.mrb[1].mxu0 }
 0x105   :  { %v357_v26 = vpop.f32.mrb[2].mxu0 }
 0x106   :  { %v591_v27 = vpop.f32.mrb[3].mxu0 }
 0x12c   :  { %v186_v14 = vpop.f32.mrb[0].mxu1 }
 0x12d   :  { %v187_v15 = vadd.f32 %v507_v13, %v186_v14  ;;  %v562_v16 = vpop.f32.mrb[1].mxu1 }
 0x12e   :  { %v189_v17 = vpop.f32.mrb[2].mxu1 }
 0x12f   :  { %v190_v18 = vadd.f32 %v507_v13, %v189_v17  ;;  %v563_v19 = vpop.f32.mrb[3].mxu1  ;;  %v193_v20 = vmax.f32 %v187_v15, 0.0 }
 0x131   :  { %v194_v21 = vmax.f32 %v190_v18, 0.0 }
 0x133   :  { %v199_v22 = vpack.c.bf16 %v194_v21, %v193_v20 }
 0x135   :  { %581 = vmatmul.mubr.bf16.vlgmr.msra.gmra.mrb[4].mxu1 %v199_v22 }
 0x208   :  { %v298_v30 = vpop.f32.mrb[4].mxu1 }
 0x209   :  { %v355_v32 = vadd.f32 %v354_v23, %v298_v30  ;;  %v582_v33 = vpop.f32.mrb[5].mxu1 }
 0x20a   :  { %v301_v34 = vpop.f32.mrb[6].mxu1 }
 0x20b   :  { %v368_v35 = vadd.f32 %v522_v31, %v355_v32  ;;  %v358_v36 = vadd.f32 %v357_v26, %v301_v34  ;;  %v583_v37 = vpop.f32.mrb[7].mxu1 }
 0x20d   :  { %v369_v38 = vadd.f32 %v522_v31, %v358_v36  ;;  %v370_v39 = vmax.f32 %v368_v35, 0.0 }
 0x20f   :  { %v371_v40 = vmax.f32 %v369_v38, 0.0 }
 0x211   :  { %v372_v0 = vpack.c.bf16 %v371_v40, %v370_v39 }
 0x213   :  { %609 = vmatmul.mubr.bf16.vlgmr.msra.gmra.mrb[4].mxu0 %v372_v0 }
 0x2e6   :  { %v478_v42 = vpop.f32.mrb[4].mxu0 }
 0x2e7   :  { %v479_v43 = vadd.f32 %v523_v41, %v478_v42  ;;  %v610_v44 = vpop.f32.mrb[5].mxu0 }
 0x2e8   :  { %v481_v45 = vpop.f32.mrb[6].mxu0 }
 0x2e9   :  { %v485_v46 = vadd.f32 %v479_v43, %v800_v3  ;;  %v482_v47 = vadd.f32 %v523_v41, %v481_v45  ;;  %v611_v48 = vpop.f32.mrb[7].mxu0 }
 0x2eb   :  { %487 = vst.msk [vmem:[#allocation7] sm:$0xff] %vm61_vm1, %v485_v46  ;;  %v486_v49 = vadd.f32 %v482_v47, %v805_v4 }
 0x2ed   :  { %488 = vst.msk [vmem:[#allocation7 + $0x8] sm:$0xff] %vm61_vm1, %v486_v49 }
 0x2ee   :  { %696 = shalt.err (!%p693_p6)
}
 0x2ef   :  { %s697_s23 = scalar_lea.hbm %s930_s8, 256 }
 0x2f0   :  { %p698_p7 = scmp.ne.s32.totalorder %s930_s8, %s697_s23  ;;  %p701_p8 = scmp.lt.u32.totalorder %s697_s23, %s930_s8 }
 0x2f2   :  { %p703_p9 = pnand %p701_p8, %p698_p7 }
 0x2f4   :  { %706 = shalt.err (!%p703_p9)
}
 0x2f5   :  { %s720_s29 = smov 128   ;;  %s721_s1 = smov 8  }
 0x2f6   :  { %500 = dma.vmem_to_hbm [thread:$0]  %s495_s5, 256, %s930_s8, [#allocation4], %s720_s29, %s720_s29, %s721_s1  }
 0x2f7   :  { %711 = dma.done.wait [#allocation4], 256  }
 0x2f8   :  { %712 = vsyncadd [#allocation4], 4294967040 }
 0x2f9   :  { %504 = vsyncpa [#allocation3], 1 }
 0x2fa   :  { %505 = vsyncpa [#allocation6], 1 }
 0x2fb   :  { %506 = vsyncpa [#allocation4], 1 }

</bundles_post_ra>
